<compile_context>
chip_gen: v5e
topology: v5e:2x2
jax: 0.10.0
libtpu: 0.0.40
codegen_flags: <defaults>
</compile_context>

<pallas_src>
import numpy as np
import jax
import jax.numpy as jnp
from jax.experimental import pallas as pl
from jax.experimental.pallas import tpu as pltpu


def _detr_post_kernel(logits_ref, bbox_ref, det_ref):
    # logits_ref: [Cp1, TN], bbox_ref: [4, TN], det_ref: [6, TN]
    logits = logits_ref[...].astype(jnp.float32)          # native dtype in, f32 compute
    cp1 = logits.shape[0]
    num_real = cp1 - 1                                     # drop "no-object" class

    # --- stable softmax pieces, unrolled over the (small, static) class axis ---
    # max over ALL classes for numerical stability
    m_all = logits[0:1, :]
    for k in range(1, cp1):
        m_all = jnp.maximum(m_all, logits[k:k + 1, :])     # [1, TN], pure VPU max

    # sum of exp over ALL classes
    e_sum = jnp.exp(logits[0:1, :] - m_all)
    for k in range(1, cp1):
        e_sum = e_sum + jnp.exp(logits[k:k + 1, :] - m_all)

    # --- max + first-index argmax over the REAL classes (softmax is monotone) ---
    best = logits[0:1, :]
    label = jnp.zeros_like(best)
    for k in range(1, num_real):
        row = logits[k:k + 1, :]
        take = row > best                                  # strict '>' keeps first-index tie-break
        best = jnp.where(take, row, best)
        label = jnp.where(take, jnp.float32(k), label)

    # only one exp + one EUP reciprocal per query (no full prob matrix / divide)
    score = jnp.exp(best - m_all) * pl.reciprocal(e_sum, approx=True)   # [1, TN]

    # --- cxcywh -> xyxy, elementwise and lane-dense ---
    b = bbox_ref[...].astype(jnp.float32)                  # [4, TN]
    cx = b[0:1, :]
    cy = b[1:2, :]
    hw = 0.5 * b[2:3, :]
    hh = 0.5 * b[3:4, :]

    # direct row writes into the lane-dense output (no concatenate)
    det_ref[0:1, :] = cx - hw
    det_ref[1:2, :] = cy - hh
    det_ref[2:3, :] = cx + hw
    det_ref[3:4, :] = cy + hh
    det_ref[4:5, :] = score
    det_ref[5:6, :] = label


def _round_up(x, m):
    return (x + m - 1) // m * m


def detr_post_process(pred_logits, pred_boxes, score_threshold, lane_tile=1024):
    """Pallas implementation of DETRPostProcess.forward.

    Returns float32 [B, Nkeep, 6] with columns [x1, y1, x2, y2, score, label]
    (same as torch.cat((bboxes, scores, labels), -1)).
    """
    B, Q, Cp1 = pred_logits.shape
    assert pred_boxes.shape == (B, Q, 4)
    N = B * Q

    # Lane tile: whole (padded) problem in one grid step when small, otherwise
    # big lane-dense tiles so per-step fixed overhead is amortized.
    tn = min(_round_up(lane_tile, 128), _round_up(N, 128))
    n_pad = _round_up(N, tn)

    # Feature-major, lane-dense slabs.  Inputs stay in their native dtype
    # (cast happens inside the kernel); padding columns are only ever sliced
    # away afterwards, so their values are irrelevant.
    logits_t = jnp.transpose(pred_logits.reshape(N, Cp1))   # [Cp1, N]
    boxes_t = jnp.transpose(pred_boxes.reshape(N, 4))       # [4, N]
    if n_pad != N:
        logits_t = jnp.pad(logits_t, ((0, 0), (0, n_pad - N)))
        boxes_t = jnp.pad(boxes_t, ((0, 0), (0, n_pad - N)))

    det_t = pl.pallas_call(
        _detr_post_kernel,
        out_shape=jax.ShapeDtypeStruct((6, n_pad), jnp.float32),
        grid_spec=pltpu.PrefetchScalarGridSpec(
            num_scalar_prefetch=0,
            grid=(n_pad // tn,),
            in_specs=[
                pl.BlockSpec((Cp1, tn), lambda i: (0, i)),
                pl.BlockSpec((4, tn), lambda i: (0, i)),
            ],
            out_specs=pl.BlockSpec((6, tn), lambda i: (0, i)),
        ),
        compiler_params=pltpu.CompilerParams(dimension_semantics=("parallel",)),
    )(logits_t, boxes_t)

    # back to [B, Q, 6] (drop lane padding)
    det = jnp.transpose(det_t[:, :N]).reshape(B, Q, 6)

    # --- dynamic-shape filtering -------------------------------------------
    # TODO(synk): torch.nonzero produces a data-dependent output shape, which
    # cannot exist inside a TPU kernel / jit; only the tiny [B, Q] score slab
    # crosses to the host, and the gather stays on-device.
    scores_host = np.asarray(det[..., 4])                        # [B, Q]
    keep = np.argwhere(scores_host > score_threshold)[..., -1]   # query indices (module assumes B == 1)
    keep = jnp.asarray(keep, dtype=jnp.int32)
    return jnp.take(det, keep, axis=1)                           # index_select along dim=1


if __name__ == "__main__":
    key = jax.random.PRNGKey(0)
    k1, k2 = jax.random.split(key)

    # batch=1 (module squeezes dim 0), 16 queries, 7 real classes + no-object
    B, Q, NUM_CLASSES_P1 = 1, 16, 8
    pred_logits = jax.random.normal(k1, (B, Q, NUM_CLASSES_P1), dtype=jnp.float32)
    pred_boxes = jax.random.uniform(k2, (B, Q, 4), dtype=jnp.float32)
    score_threshold = 0.2

    result = detr_post_process(pred_logits, pred_boxes, score_threshold)
    jax.block_until_ready(result)
    assert result.ndim == 3 and result.shape[0] == B and result.shape[-1] == 6
    print("KERNEL_OK")
</pallas_src>

<mosaic_0001>
module attributes {stable_mosaic.version = 11 : i64} {
  func.func @_detr_post_kernel(%arg0: i32, %arg1: memref<8x128xf32, #tpu.memory_space<vmem>>, %arg2: memref<4x128xf32, #tpu.memory_space<vmem>>, %arg3: memref<6x128xf32, #tpu.memory_space<vmem>>) attributes {dimension_semantics = [#tpu.dimension_semantics<parallel>], iteration_bounds = array<i64: 1>, scalar_prefetch = 0 : i64, scratch_operands = 0 : i64, tpu.core_type = #tpu.core_type<tc>, window_params = [{transform_indices = @transform_0, window_bounds = array<i64: 8, 128>}, {transform_indices = @transform_1, window_bounds = array<i64: 4, 128>}, {transform_indices = @transform_2, window_bounds = array<i64: 6, 128>}]} {
    %c0 = arith.constant 0 : index
    %c0_0 = arith.constant 0 : index
    %0 = vector.load %arg1[%c0, %c0_0] : memref<8x128xf32, #tpu.memory_space<vmem>>, vector<8x128xf32>
    %1 = vector.extract_strided_slice %0 {offsets = [0, 0], sizes = [1, 128], strides = [1, 1]} : vector<8x128xf32> to vector<1x128xf32>
    %2 = vector.extract_strided_slice %0 {offsets = [1, 0], sizes = [1, 128], strides = [1, 1]} : vector<8x128xf32> to vector<1x128xf32>
    %3 = arith.maximumf %1, %2 : vector<1x128xf32>
    %4 = vector.extract_strided_slice %0 {offsets = [2, 0], sizes = [1, 128], strides = [1, 1]} : vector<8x128xf32> to vector<1x128xf32>
    %5 = arith.maximumf %3, %4 : vector<1x128xf32>
    %6 = vector.extract_strided_slice %0 {offsets = [3, 0], sizes = [1, 128], strides = [1, 1]} : vector<8x128xf32> to vector<1x128xf32>
    %7 = arith.maximumf %5, %6 : vector<1x128xf32>
    %8 = vector.extract_strided_slice %0 {offsets = [4, 0], sizes = [1, 128], strides = [1, 1]} : vector<8x128xf32> to vector<1x128xf32>
    %9 = arith.maximumf %7, %8 : vector<1x128xf32>
    %10 = vector.extract_strided_slice %0 {offsets = [5, 0], sizes = [1, 128], strides = [1, 1]} : vector<8x128xf32> to vector<1x128xf32>
    %11 = arith.maximumf %9, %10 : vector<1x128xf32>
    %12 = vector.extract_strided_slice %0 {offsets = [6, 0], sizes = [1, 128], strides = [1, 1]} : vector<8x128xf32> to vector<1x128xf32>
    %13 = arith.maximumf %11, %12 : vector<1x128xf32>
    %14 = vector.extract_strided_slice %0 {offsets = [7, 0], sizes = [1, 128], strides = [1, 1]} : vector<8x128xf32> to vector<1x128xf32>
    %15 = arith.maximumf %13, %14 : vector<1x128xf32>
    %16 = vector.extract_strided_slice %0 {offsets = [0, 0], sizes = [1, 128], strides = [1, 1]} : vector<8x128xf32> to vector<1x128xf32>
    %17 = arith.subf %16, %15 : vector<1x128xf32>
    %18 = math.exp %17 : vector<1x128xf32>
    %19 = vector.extract_strided_slice %0 {offsets = [1, 0], sizes = [1, 128], strides = [1, 1]} : vector<8x128xf32> to vector<1x128xf32>
    %20 = arith.subf %19, %15 : vector<1x128xf32>
    %21 = math.exp %20 : vector<1x128xf32>
    %22 = arith.addf %18, %21 : vector<1x128xf32>
    %23 = vector.extract_strided_slice %0 {offsets = [2, 0], sizes = [1, 128], strides = [1, 1]} : vector<8x128xf32> to vector<1x128xf32>
    %24 = arith.subf %23, %15 : vector<1x128xf32>
    %25 = math.exp %24 : vector<1x128xf32>
    %26 = arith.addf %22, %25 : vector<1x128xf32>
    %27 = vector.extract_strided_slice %0 {offsets = [3, 0], sizes = [1, 128], strides = [1, 1]} : vector<8x128xf32> to vector<1x128xf32>
    %28 = arith.subf %27, %15 : vector<1x128xf32>
    %29 = math.exp %28 : vector<1x128xf32>
    %30 = arith.addf %26, %29 : vector<1x128xf32>
    %31 = vector.extract_strided_slice %0 {offsets = [4, 0], sizes = [1, 128], strides = [1, 1]} : vector<8x128xf32> to vector<1x128xf32>
    %32 = arith.subf %31, %15 : vector<1x128xf32>
    %33 = math.exp %32 : vector<1x128xf32>
    %34 = arith.addf %30, %33 : vector<1x128xf32>
    %35 = vector.extract_strided_slice %0 {offsets = [5, 0], sizes = [1, 128], strides = [1, 1]} : vector<8x128xf32> to vector<1x128xf32>
    %36 = arith.subf %35, %15 : vector<1x128xf32>
    %37 = math.exp %36 : vector<1x128xf32>
    %38 = arith.addf %34, %37 : vector<1x128xf32>
    %39 = vector.extract_strided_slice %0 {offsets = [6, 0], sizes = [1, 128], strides = [1, 1]} : vector<8x128xf32> to vector<1x128xf32>
    %40 = arith.subf %39, %15 : vector<1x128xf32>
    %41 = math.exp %40 : vector<1x128xf32>
    %42 = arith.addf %38, %41 : vector<1x128xf32>
    %43 = vector.extract_strided_slice %0 {offsets = [7, 0], sizes = [1, 128], strides = [1, 1]} : vector<8x128xf32> to vector<1x128xf32>
    %44 = arith.subf %43, %15 : vector<1x128xf32>
    %45 = math.exp %44 : vector<1x128xf32>
    %46 = arith.addf %42, %45 : vector<1x128xf32>
    %47 = vector.extract_strided_slice %0 {offsets = [0, 0], sizes = [1, 128], strides = [1, 1]} : vector<8x128xf32> to vector<1x128xf32>
    %cst = arith.constant 0.000000e+00 : f32
    %48 = vector.broadcast %cst : f32 to vector<1x128xf32>
    %49 = vector.extract_strided_slice %0 {offsets = [1, 0], sizes = [1, 128], strides = [1, 1]} : vector<8x128xf32> to vector<1x128xf32>
    %50 = arith.cmpf ogt, %49, %47 : vector<1x128xf32>
    %51 = arith.select %50, %49, %47 : vector<1x128xi1>, vector<1x128xf32>
    %cst_1 = arith.constant 1.000000e+00 : f32
    %52 = vector.broadcast %cst_1 : f32 to vector<1x128xf32>
    %53 = arith.select %50, %52, %48 : vector<1x128xi1>, vector<1x128xf32>
    %54 = vector.extract_strided_slice %0 {offsets = [2, 0], sizes = [1, 128], strides = [1, 1]} : vector<8x128xf32> to vector<1x128xf32>
    %55 = arith.cmpf ogt, %54, %51 : vector<1x128xf32>
    %56 = arith.select %55, %54, %51 : vector<1x128xi1>, vector<1x128xf32>
    %cst_2 = arith.constant 2.000000e+00 : f32
    %57 = vector.broadcast %cst_2 : f32 to vector<1x128xf32>
    %58 = arith.select %55, %57, %53 : vector<1x128xi1>, vector<1x128xf32>
    %59 = vector.extract_strided_slice %0 {offsets = [3, 0], sizes = [1, 128], strides = [1, 1]} : vector<8x128xf32> to vector<1x128xf32>
    %60 = arith.cmpf ogt, %59, %56 : vector<1x128xf32>
    %61 = arith.select %60, %59, %56 : vector<1x128xi1>, vector<1x128xf32>
    %cst_3 = arith.constant 3.000000e+00 : f32
    %62 = vector.broadcast %cst_3 : f32 to vector<1x128xf32>
    %63 = arith.select %60, %62, %58 : vector<1x128xi1>, vector<1x128xf32>
    %64 = vector.extract_strided_slice %0 {offsets = [4, 0], sizes = [1, 128], strides = [1, 1]} : vector<8x128xf32> to vector<1x128xf32>
    %65 = arith.cmpf ogt, %64, %61 : vector<1x128xf32>
    %66 = arith.select %65, %64, %61 : vector<1x128xi1>, vector<1x128xf32>
    %cst_4 = arith.constant 4.000000e+00 : f32
    %67 = vector.broadcast %cst_4 : f32 to vector<1x128xf32>
    %68 = arith.select %65, %67, %63 : vector<1x128xi1>, vector<1x128xf32>
    %69 = vector.extract_strided_slice %0 {offsets = [5, 0], sizes = [1, 128], strides = [1, 1]} : vector<8x128xf32> to vector<1x128xf32>
    %70 = arith.cmpf ogt, %69, %66 : vector<1x128xf32>
    %71 = arith.select %70, %69, %66 : vector<1x128xi1>, vector<1x128xf32>
    %cst_5 = arith.constant 5.000000e+00 : f32
    %72 = vector.broadcast %cst_5 : f32 to vector<1x128xf32>
    %73 = arith.select %70, %72, %68 : vector<1x128xi1>, vector<1x128xf32>
    %74 = vector.extract_strided_slice %0 {offsets = [6, 0], sizes = [1, 128], strides = [1, 1]} : vector<8x128xf32> to vector<1x128xf32>
    %75 = arith.cmpf ogt, %74, %71 : vector<1x128xf32>
    %76 = arith.select %75, %74, %71 : vector<1x128xi1>, vector<1x128xf32>
    %cst_6 = arith.constant 6.000000e+00 : f32
    %77 = vector.broadcast %cst_6 : f32 to vector<1x128xf32>
    %78 = arith.select %75, %77, %73 : vector<1x128xi1>, vector<1x128xf32>
    %79 = arith.subf %76, %15 : vector<1x128xf32>
    %80 = math.exp %79 : vector<1x128xf32>
    %81 = tpu.reciprocal %46 {approx = true} : vector<1x128xf32> -> vector<1x128xf32>
    %82 = arith.mulf %80, %81 : vector<1x128xf32>
    %c0_7 = arith.constant 0 : index
    %c0_8 = arith.constant 0 : index
    %83 = vector.load %arg2[%c0_7, %c0_8] : memref<4x128xf32, #tpu.memory_space<vmem>>, vector<4x128xf32>
    %84 = vector.extract_strided_slice %83 {offsets = [0, 0], sizes = [1, 128], strides = [1, 1]} : vector<4x128xf32> to vector<1x128xf32>
    %85 = vector.extract_strided_slice %83 {offsets = [1, 0], sizes = [1, 128], strides = [1, 1]} : vector<4x128xf32> to vector<1x128xf32>
    %86 = vector.extract_strided_slice %83 {offsets = [2, 0], sizes = [1, 128], strides = [1, 1]} : vector<4x128xf32> to vector<1x128xf32>
    %cst_9 = arith.constant 5.000000e-01 : f32
    %87 = vector.broadcast %cst_9 : f32 to vector<1x128xf32>
    %88 = arith.mulf %87, %86 : vector<1x128xf32>
    %89 = vector.extract_strided_slice %83 {offsets = [3, 0], sizes = [1, 128], strides = [1, 1]} : vector<4x128xf32> to vector<1x128xf32>
    %cst_10 = arith.constant 5.000000e-01 : f32
    %90 = vector.broadcast %cst_10 : f32 to vector<1x128xf32>
    %91 = arith.mulf %90, %89 : vector<1x128xf32>
    %92 = arith.subf %84, %88 : vector<1x128xf32>
    %c0_11 = arith.constant 0 : index
    %c0_12 = arith.constant 0 : index
    %93 = vector.load %arg3[%c0_11, %c0_12] : memref<6x128xf32, #tpu.memory_space<vmem>>, vector<1x128xf32>
    tpu.vector_store %arg3[%c0_11, %c0_12], %92 {strides = array<i32>} : memref<6x128xf32, #tpu.memory_space<vmem>>, vector<1x128xf32>,
    %94 = arith.subf %85, %91 : vector<1x128xf32>
    %c1 = arith.constant 1 : index
    %c0_13 = arith.constant 0 : index
    %95 = vector.load %arg3[%c1, %c0_13] : memref<6x128xf32, #tpu.memory_space<vmem>>, vector<1x128xf32>
    tpu.vector_store %arg3[%c1, %c0_13], %94 {strides = array<i32>} : memref<6x128xf32, #tpu.memory_space<vmem>>, vector<1x128xf32>,
    %96 = arith.addf %84, %88 : vector<1x128xf32>
    %c2 = arith.constant 2 : index
    %c0_14 = arith.constant 0 : index
    %97 = vector.load %arg3[%c2, %c0_14] : memref<6x128xf32, #tpu.memory_space<vmem>>, vector<1x128xf32>
    tpu.vector_store %arg3[%c2, %c0_14], %96 {strides = array<i32>} : memref<6x128xf32, #tpu.memory_space<vmem>>, vector<1x128xf32>,
    %98 = arith.addf %85, %91 : vector<1x128xf32>
    %c3 = arith.constant 3 : index
    %c0_15 = arith.constant 0 : index
    %99 = vector.load %arg3[%c3, %c0_15] : memref<6x128xf32, #tpu.memory_space<vmem>>, vector<1x128xf32>
    tpu.vector_store %arg3[%c3, %c0_15], %98 {strides = array<i32>} : memref<6x128xf32, #tpu.memory_space<vmem>>, vector<1x128xf32>,
    %c4 = arith.constant 4 : index
    %c0_16 = arith.constant 0 : index
    %100 = vector.load %arg3[%c4, %c0_16] : memref<6x128xf32, #tpu.memory_space<vmem>>, vector<1x128xf32>
    tpu.vector_store %arg3[%c4, %c0_16], %82 {strides = array<i32>} : memref<6x128xf32, #tpu.memory_space<vmem>>, vector<1x128xf32>,
    %c5 = arith.constant 5 : index
    %c0_17 = arith.constant 0 : index
    %101 = vector.load %arg3[%c5, %c0_17] : memref<6x128xf32, #tpu.memory_space<vmem>>, vector<1x128xf32>
    tpu.vector_store %arg3[%c5, %c0_17], %78 {strides = array<i32>} : memref<6x128xf32, #tpu.memory_space<vmem>>, vector<1x128xf32>,
    return
  }
  func.func @transform_0(%arg0: i32) -> (i32, i32) {
    %c0_i32 = arith.constant 0 : i32
    %c0_i32_0 = arith.constant 0 : i32
    return %c0_i32, %arg0 : i32, i32
  }
  func.func @transform_1(%arg0: i32) -> (i32, i32) {
    %c0_i32 = arith.constant 0 : i32
    %c0_i32_0 = arith.constant 0 : i32
    return %c0_i32, %arg0 : i32, i32
  }
  func.func @transform_2(%arg0: i32) -> (i32, i32) {
    %c0_i32 = arith.constant 0 : i32
    %c0_i32_0 = arith.constant 0 : i32
    return %c0_i32, %arg0 : i32, i32
  }
}

</mosaic_0001>

<bundles_post_ra>
// kernel: tpu_custom_call.1
= control target key start
LH: loop header
LB: loop body
LE: loop exit
PB: predicated region body
PF: predicated region fallthrough
CT: control target
= control target key end

     0   :  { %7 = vsyncpa [#allocation3], 0  ;;  %s395_s0 = inlined_call_operand.hbm [shape: f32[8,128], index: 0, kind: input, shape index: {}]   ;;  %s396_s1 = inlined_call_operand.hbm [shape: f32[4,128], index: 1, kind: input, shape index: {}]   ;;  %s397_s2 = inlined_call_operand.hbm [shape: f32[6,128], index: 2, kind: output, shape index: {}]  }
   0x1   :  { %8 = vsyncpa [#allocation6], 0 }
   0x2   :  { %9 = vsyncpa [#allocation4], 0  ;;  %s15_s11 = sshll.u32 %s395_s0, 4  ;;  %s319_s12 = smov [#allocation2]   ;;  %s16_s11 = int_to_ptr.hbm [resolvable:$true] %s15_s11 }
   0x3   :  { %s17_s13 = sshll.u32 %s319_s12, 4  ;;  %s26_s16 = sshll.u32 %s396_s1, 4  ;;  %s18_s13 = int_to_ptr.vmem [resolvable:$true] %s17_s13  ;;  %s27_s16 = int_to_ptr.hbm [resolvable:$true] %s26_s16 }
   0x4   :  { %20 = dma.hbm_to_vmem [thread:$0]  %s16_s11, 128, %s18_s13, [#allocation3]  }
   0x5   :  { %s320_s17 = smov [#allocation5]  }
   0x6   :  { %s28_s18 = sshll.u32 %s320_s17, 4  ;;  %s29_s18 = int_to_ptr.vmem [resolvable:$true] %s28_s18 }
   0x7   :  { %31 = dma.hbm_to_vmem [thread:$0]  %s27_s16, 64, %s29_s18, [#allocation6]  }
   0x8   :  { %313 = dma.done.wait [#allocation3], 128  }
   0x9   :  { %314 = vsyncadd [#allocation3], 4294967168 }
   0xa   :  { %315 = dma.done.wait [#allocation6], 64  }
   0xb   :  { %316 = vsyncadd [#allocation6], 4294967232  ;;  %v344_v0 = vld [vmem:[#allocation2] sm:$0xff]  ;;  %v186_v1 = vld [vmem:[#allocation5] sm:$0xf]  ;;  %v321_v20 = vmov 0.0  }
   0xc   :  { %v187_v2 = vmul.f32 0.5, %v186_v1  ;;  %v42_v3 = vrot.slane %v344_v0, 1  ;;  %v45_v4 = vrot.slane %v344_v0, 2  ;;  %v60_v5 = vrot.slane %v344_v0, 7  ;;  %s322_s0 = smov [#allocation7]   ;;  %s206_s21 = sshll.u32 %s397_s2, 4  ;;  %s207_s21 = int_to_ptr.hbm [resolvable:$true] %s206_s21 }
   0xd   :  { %v48_v8 = vrot.slane %v344_v0, 3  ;;  %v51_v9 = vrot.slane %v344_v0, 4  ;;  %v54_v16 = vrot.slane %v344_v0, 5  ;;  %v57_v18 = vrot.slane %v344_v0, 6  ;;  %s204_s1 = sshll.u32 %s322_s0, 4  ;;  %s205_s1 = int_to_ptr.vmem [resolvable:$true] %s204_s1 }
   0xe   :  { %v189_v6 = vrot.slane %v187_v2, 2  ;;  %v44_v7 = vmax.f32 %v344_v0, %v42_v3  ;;  %vm130_vm0 = vcmp.gt.f32.partialorder %v344_v0, %v60_v5 }
   0xf   :  { %v131_v13 = vsel %vm130_vm0, %v344_v0, %v60_v5  ;;  %v132_v21 = vsel %vm130_vm0, 1.0, %v321_v20 }
  0x10   :  { %v191_v10 = vsub.f32 %v186_v1, %v189_v6  ;;  %v194_v11 = vadd.f32 %v189_v6, %v186_v1  ;;  %v47_v12 = vmax.f32 %v44_v7, %v45_v4  ;;  %v134_v14 = vrot.slane %v131_v13, 7 }
  0x11   :  { %v139_v23 = vrot.slane %v132_v21, 7 }
  0x12   :  { %192 = vst [vmem:[#allocation7] sm:$0x3] %v191_v10   ;;  %v50_v15 = vmax.f32 %v47_v12, %v48_v8  ;;  %vm136_vm1 = vcmp.gt.f32.partialorder %v344_v0, %v134_v14 }
  0x13   :  { %195 = vst [vmem:[#allocation7 + $0x2] sm:$0x3] %v194_v11   ;;  %v137_v19 = vsel %vm136_vm1, %v344_v0, %v134_v14  ;;  %v141_v25 = vsel %vm136_vm1, 2.0, %v139_v23 }
  0x14   :  { %v53_v17 = vmax.f32 %v50_v15, %v51_v9  ;;  %v143_v22 = vrot.slane %v137_v19, 7  ;;  %v148_v28 = vrot.slane %v141_v25, 7 }
  0x16   :  { %v56_v24 = vmax.f32 %v53_v17, %v54_v16  ;;  %vm145_vm2 = vcmp.gt.f32.partialorder %v344_v0, %v143_v22 }
  0x17   :  { %v146_v27 = vsel %vm145_vm2, %v344_v0, %v143_v22  ;;  %v150_v31 = vsel %vm145_vm2, 3.0, %v148_v28 }
  0x18   :  { %v59_v26 = vmax.f32 %v56_v24, %v57_v18  ;;  %v152_v29 = vrot.slane %v146_v27, 7  ;;  %v157_v33 = vrot.slane %v150_v31, 7 }
  0x1a   :  { %v360_v30 = vmax.f32 %v59_v26, %v60_v5  ;;  %vm363_vm3 = vcmp.gt.f32.partialorder %v344_v0, %v152_v29 }
  0x1b   :  { %v155_v54 = vsel %vm363_vm3, %v344_v0, %v152_v29  ;;  %v159_v57 = vsel %vm363_vm3, 4.0, %v157_v33 }
  0x1c   :  { %v63_v34 = vsub.f32 %v344_v0, %v360_v30  ;;  %v67_v35 = vrot.slane %v360_v30, 7  ;;  %v76_v36 = vrot.slane %v360_v30, 6  ;;  %v85_v37 = vrot.slane %v360_v30, 5 }
  0x1d   :  { %v94_v38 = vrot.slane %v360_v30, 4  ;;  %v103_v39 = vrot.slane %v360_v30, 3  ;;  %v112_v40 = vrot.slane %v360_v30, 2  ;;  %v121_v41 = vrot.slane %v360_v30, 1 }
  0x1e   :  { %v64_v42 = vmul.f32 1.442695, %v63_v34  ;;  %v69_v43 = vsub.f32 %v344_v0, %v67_v35  ;;  %v78_v44 = vsub.f32 %v344_v0, %v76_v36  ;;  %v87_v45 = vsub.f32 %v344_v0, %v85_v37 }
  0x1f   :  { %v96_v46 = vsub.f32 %v344_v0, %v94_v38  ;;  %v105_v47 = vsub.f32 %v344_v0, %v103_v39  ;;  %v114_v51 = vsub.f32 %v344_v0, %v112_v40  ;;  %v123_v53 = vsub.f32 %v344_v0, %v121_v41 }
  0x20   :  { %v70_v48 = vmul.f32 1.442695, %v69_v43  ;;  %v79_v49 = vmul.f32 1.442695, %v78_v44  ;;  %v88_v50 = vmul.f32 1.442695, %v87_v45  ;;  %221 = vpow2.f32 %v64_v42 }
  0x21   :  { %v97_v52 = vmul.f32 1.442695, %v96_v46  ;;  %v106_v55 = vmul.f32 1.442695, %v105_v47  ;;  %v161_v56 = vrot.slane %v155_v54, 7  ;;  %v166_v58 = vrot.slane %v159_v57, 7 }
  0x22   :  { %223 = vpow2.f32 %v70_v48  ;;  %v115_v59 = vmul.f32 1.442695, %v114_v51  ;;  %v124_v62 = vmul.f32 1.442695, %v123_v53 }
  0x23   :  { %225 = vpow2.f32 %v79_v49  ;;  %vm163_vm4 = vcmp.gt.f32.partialorder %v344_v0, %v161_v56 }
  0x24   :  { %227 = vpow2.f32 %v88_v50  ;;  %v164_v60 = vsel %vm163_vm4, %v344_v0, %v161_v56  ;;  %v168_v61 = vsel %vm163_vm4, 5.0, %v166_v58 }
  0x25   :  { %229 = vpow2.f32 %v97_v52  ;;  %v170_v63 = vrot.slane %v164_v60, 7  ;;  %v175_v1 = vrot.slane %v168_v61, 7 }
  0x26   :  { %231 = vpow2.f32 %v106_v55  ;;  %v222_v2 = vpop.eup %221 }
  0x27   :  { %233 = vpow2.f32 %v115_v59  ;;  %vm172_vm5 = vcmp.gt.f32.partialorder %v344_v0, %v170_v63 }
  0x28   :  { %v224_v3 = vpop.eup %223  ;;  %v177_v6 = vsel %vm172_vm5, 6.0, %v175_v1  ;;  %235 = vpow2.f32 %v124_v62  ;;  %v173_v15 = vsel %vm172_vm5, %v344_v0, %v170_v63 }
  0x29   :  { %v226_v4 = vpop.eup %225  ;;  %v73_v5 = vrot.slane %v224_v3, 1  ;;  %198 = vst [vmem:[#allocation7 - $0x1] sm:$0x40] %v177_v6  ;;  %v178_v20 = vsub.f32 %v173_v15, %v112_v40 }
  0x2a   :  { %v228_v7 = vpop.eup %227  ;;  %v82_v8 = vrot.slane %v226_v4, 2 }
  0x2b   :  { %v230_v9 = vpop.eup %229  ;;  %v75_v10 = vadd.f32 %v222_v2, %v73_v5  ;;  %v91_v11 = vrot.slane %v228_v7, 3  ;;  %v179_v25 = vmul.f32 1.442695, %v178_v20 }
  0x2c   :  { %v232_v12 = vpop.eup %231  ;;  %v100_v14 = vrot.slane %v230_v9, 4 }
  0x2d   :  { %v84_v13 = vadd.f32 %v82_v8, %v75_v10  ;;  %v234_v16 = vpop.eup %233  ;;  %v109_v18 = vrot.slane %v232_v12, 5  ;;  %237 = vpow2.f32 %v179_v25 }
  0x2e   :  { %v236_v19 = vpop.eup %235  ;;  %v118_v22 = vrot.slane %v234_v16, 6 }
  0x2f   :  { %v93_v17 = vadd.f32 %v91_v11, %v84_v13  ;;  %v127_v24 = vrot.slane %v236_v19, 7 }
  0x31   :  { %v102_v21 = vadd.f32 %v100_v14, %v93_v17 }
  0x33   :  { %v111_v23 = vadd.f32 %v109_v18, %v102_v21  ;;  %v238_v28 = vpop.eup %237 }
  0x35   :  { %v120_v26 = vadd.f32 %v118_v22, %v111_v23 }
  0x37   :  { %v129_v27 = vadd.f32 %v127_v24, %v120_v26 }
  0x39   :  { %239 = vrcp.f32 %v129_v27 }
  0x3f   :  { %v240_v29 = vpop.eup %239 }
  0x40   :  { %v183_v0 = vrot.slane %v240_v29, 2 }
  0x42   :  { %v185_v30 = vmul.f32 %v238_v28, %v183_v0 }
  0x44   :  { %197 = vst [vmem:[#allocation7 - $0x2] sm:$0x40] %v185_v30 }
  0x45   :  { %209 = dma.vmem_to_hbm [thread:$0]  %s205_s1, 128, %s207_s21, [#allocation4]  }
  0x46   :  { %317 = dma.done.wait [#allocation4], 128  }
  0x47   :  { %318 = vsyncadd [#allocation4], 4294967168 }
  0x48   :  { %214 = vsyncpa [#allocation3], 1 }
  0x49   :  { %215 = vsyncpa [#allocation6], 1 }
  0x4a   :  { %216 = vsyncpa [#allocation4], 1 }

</bundles_post_ra>
